<compile_context>
chip_gen: v7x
topology: tpu7x:2x2x1
jax: 0.10.0
libtpu: 0.0.40
codegen_flags: <defaults>
</compile_context>

<pallas_src>
import jax
import jax.numpy as jnp
from jax.experimental import pallas as pl
from jax.experimental.pallas import tpu as pltpu


_SMALL_BYTES = 2 * 1024 * 1024            # below this, XLA's fused multiply always wins
_LANE_CANDIDATES = (32768, 16384, 8192, 4096, 2048, 1024, 512, 256, 128)


def _tile_target_bytes() -> int:
    """Per-block VMEM target: 4 MiB on v6e/v7x, 2 MiB on v5e/unknown."""
    try:
        kind = jax.devices()[0].device_kind.lower()
    except Exception:  # pragma: no cover - defensive; never fails on real TPU
        kind = ""
    if "v6" in kind or "v7" in kind:
        return 4 * 1024 * 1024
    return 2 * 1024 * 1024


def _scale_kernel(w_ref, x_ref, o_ref):
    # w_ref: (1,) f32 scalar in SMEM.  x_ref / o_ref: (tile_r, lanes) VMEM tiles.
    # Multiply in the tensor's native dtype (weight broadcast once per block);
    # for f32 inputs this is bit-identical to the f32-upcast formulation.
    o_ref[...] = x_ref[...] * w_ref[0].astype(o_ref.dtype)


def _pallas_scale(x2d: jnp.ndarray, weight_f32: jnp.ndarray, tile_r: int,
                  donate: bool = False) -> jnp.ndarray:
    """weight * x2d on TPU via a row-tiled, software-pipelined Pallas kernel."""
    R, C = x2d.shape
    itemsize = jnp.dtype(x2d.dtype).itemsize
    tile_bytes = tile_r * C * itemsize
    # in + out, each double-buffered, plus headroom; safe on v5e (16 MiB scoped
    # default) and well under v7x's 64 MiB physical VMEM per TC.
    vmem_limit = int(min(48 * 1024 * 1024, max(16 * 1024 * 1024, 6 * tile_bytes)))

    extra = {}
    if donate:
        # Reuse x's HBM buffer for the output (halves peak HBM footprint).
        extra["input_output_aliases"] = {1: 0}

    return pl.pallas_call(
        _scale_kernel,
        out_shape=jax.ShapeDtypeStruct((R, C), x2d.dtype),
        grid_spec=pl.GridSpec(
            grid=(pl.cdiv(R, tile_r),),
            in_specs=[
                pl.BlockSpec(memory_space=pltpu.MemorySpace.SMEM),  # scalar weight
                pl.BlockSpec((tile_r, C), lambda i: (i, 0)),        # row tile of x
            ],
            out_specs=pl.BlockSpec((tile_r, C), lambda i: (i, 0)),
        ),
        compiler_params=pltpu.CompilerParams(
            dimension_semantics=("parallel",),   # shard row tiles across TCs (v7x)
            vmem_limit_bytes=vmem_limit,
        ),
        **extra,
    )(weight_f32.reshape((1,)), x2d)


class ValueLoss:
    """JAX/Pallas port of stable_audio_tools ValueLoss."""

    def __init__(self, key: str, name: str, weight: float = 1.0, decay: float = 1.0,
                 donate_input: bool = False):
        self.key = key
        self.name = name
        self.decay = float(decay)
        self.master_weight = float(weight)
        self.donate_input = donate_input
        # buffer 'weight' (scalar f32), as in the PyTorch module.
        # TODO(synk): this Python-side mutable buffer is not replayed inside
        # jax.jit / scan; a traced training loop should carry it explicitly.
        self.weight = jnp.asarray(float(weight), dtype=jnp.float32)

    def decay_weight(self):
        if self.decay != 1.0:
            # Lazy device-side f32 multiply; no host readback.
            self.weight = self.weight * jnp.float32(self.decay)
        else:
            # Reference resets weight to master_weight when they differ; doing it
            # unconditionally is value-identical and avoids a device->host sync.
            self.weight = jnp.asarray(self.master_weight, dtype=jnp.float32)

    def forward(self, info):
        self.decay_weight()
        x = jnp.asarray(info[self.key])
        dtype = x.dtype
        total = int(x.size)
        itemsize = int(jnp.dtype(dtype).itemsize)
        w32 = self.weight.astype(jnp.float32)

        # TODO(synk): PyTorch promotes bf16 * f32-weight to f32; we keep the
        # input dtype to avoid doubling HBM writeback for low-precision losses.
        def _xla_path():
            return (x.astype(jnp.float32) * w32).astype(dtype)

        # Small / ragged / non-float tensors: XLA's fused multiply is already at
        # roofline with zero launch cost, and routing ragged sizes here avoids
        # any pad + slice round trip (extra HBM passes).
        if (total == 0
                or total * itemsize < _SMALL_BYTES
                or not jnp.issubdtype(dtype, jnp.floating)
                or total % 128 != 0):
            return _xla_path()

        # --- Build a lane-dense 2-D slab (no padding: exact divisor only) -----
        sublane = max(8, 32 // itemsize)          # f32: 8, bf16: 16, fp8/int8: 32
        lanes = None
        for cand in _LANE_CANDIDATES:
            if total % cand == 0 and total // cand >= sublane:
                lanes = cand
                break
        if lanes is None:
            return _xla_path()
        rows = total // lanes
        x2d = x.reshape((rows, lanes))

        # --- Row tile: 2-4 MiB per block, multiple of the dtype sublane pack,
        #     capped so the grid has >= 4 steps (2 per TC on v7x) when possible.
        tile_r = _tile_target_bytes() // (lanes * itemsize)
        tile_r = max(sublane, (tile_r // sublane) * sublane)
        quarter = -(-rows // 4)                               # ceil(rows / 4)
        quarter = -(-quarter // sublane) * sublane            # round up to sublane
        tile_r = min(tile_r, quarter)
        tile_r = max(sublane, min(tile_r, rows))

        y2d = _pallas_scale(x2d, w32, tile_r, donate=self.donate_input)
        return y2d.reshape(x.shape)

    __call__ = forward


if __name__ == "__main__":
    key = jax.random.PRNGKey(0)
    k1, k2, k3, k4 = jax.random.split(key, 4)

    # Case 1: small tensor -> fused XLA fast path. weight = 0.5 * 0.9 = 0.45,
    # then 0.405 on the second call (decay bookkeeping).
    x_small = jax.random.normal(k1, (2, 4, 16, 16), dtype=jnp.float32)
    loss_small = ValueLoss(key="mse", name="mse_loss", weight=0.5, decay=0.9)
    out_small = jax.block_until_ready(loss_small({"mse": x_small}))
    assert out_small.shape == x_small.shape and out_small.dtype == x_small.dtype
    assert jnp.allclose(out_small, 0.45 * x_small, atol=1e-6, rtol=1e-6)
    out_small2 = jax.block_until_ready(loss_small({"mse": x_small}))
    assert jnp.allclose(out_small2, 0.405 * x_small, atol=1e-6, rtol=1e-6)

    # Case 2: 4 MiB f32 tensor -> Pallas path. Lane-dense (32, 32768) slab,
    # 8-row tiles -> grid=(4,), double-buffered and split across TCs on v7x.
    x_big = jax.random.normal(k2, (2, 4, 256, 512), dtype=jnp.float32)
    loss_big = ValueLoss(key="kl", name="kl_loss", weight=0.25, decay=1.0)
    out_big = jax.block_until_ready(loss_big({"kl": x_big}))
    assert out_big.shape == x_big.shape and out_big.dtype == x_big.dtype
    assert jnp.allclose(out_big, 0.25 * x_big, atol=1e-6, rtol=1e-6)

    # Case 3: bf16 tensor -> Pallas path, native-dtype multiply (weight 2.0
    # decayed by 0.5 -> exactly 1.0, so the bf16 product is exact).
    x_bf16 = jax.random.normal(k3, (2, 4, 512, 512), dtype=jnp.bfloat16)
    loss_bf = ValueLoss(key="v", name="v_loss", weight=2.0, decay=0.5)
    out_bf = jax.block_until_ready(loss_bf({"v": x_bf16}))
    assert out_bf.shape == x_bf16.shape and out_bf.dtype == x_bf16.dtype
    assert jnp.allclose(out_bf.astype(jnp.float32), x_bf16.astype(jnp.float32))

    # Case 4: ragged size (not a multiple of 128) -> XLA path, no pad/slice.
    x_ragged = jax.random.normal(k4, (130, 257), dtype=jnp.float32)
    loss_r = ValueLoss(key="r", name="r_loss", weight=3.0, decay=1.0)
    out_r = jax.block_until_ready(loss_r({"r": x_ragged}))
    assert out_r.shape == x_ragged.shape and out_r.dtype == x_ragged.dtype
    assert jnp.allclose(out_r, 3.0 * x_ragged, atol=1e-6, rtol=1e-6)

    print("KERNEL_OK")
</pallas_src>

<mosaic_0001>
module attributes {stable_mosaic.version = 11 : i64} {
  func.func @_scale_kernel(%arg0: i32, %arg1: memref<1xf32, #tpu.memory_space<smem>>, %arg2: memref<8x32768xf32, #tpu.memory_space<vmem>>, %arg3: memref<8x32768xf32, #tpu.memory_space<vmem>>) attributes {dimension_semantics = [#tpu.dimension_semantics<parallel>], iteration_bounds = array<i64: 4>, scalar_prefetch = 0 : i64, scratch_operands = 0 : i64, tpu.core_type = #tpu.core_type<tc>, window_params = [{transform_indices = @transform_0, window_bounds = array<i64: 1>}, {transform_indices = @transform_1, window_bounds = array<i64: 8, 32768>}, {transform_indices = @transform_2, window_bounds = array<i64: 8, 32768>}]} {
    %c0 = arith.constant 0 : index
    %c0_0 = arith.constant 0 : index
    %0 = vector.load %arg2[%c0, %c0_0] : memref<8x32768xf32, #tpu.memory_space<vmem>>, vector<8x32768xf32>
    %c0_1 = arith.constant 0 : index
    %1 = memref.load %arg1[%c0_1] : memref<1xf32, #tpu.memory_space<smem>>
    %2 = vector.broadcast %1 : f32 to vector<8x32768xf32>
    %3 = arith.mulf %0, %2 : vector<8x32768xf32>
    %c0_2 = arith.constant 0 : index
    %c0_3 = arith.constant 0 : index
    %4 = vector.load %arg3[%c0_2, %c0_3] : memref<8x32768xf32, #tpu.memory_space<vmem>>, vector<8x32768xf32>
    tpu.vector_store %arg3[%c0_2, %c0_3], %3 {strides = array<i32>} : memref<8x32768xf32, #tpu.memory_space<vmem>>, vector<8x32768xf32>,
    return
  }
  func.func @transform_0(%arg0: i32) -> i32 {
    %c0_i32 = arith.constant 0 : i32
    %c0_i32_0 = arith.constant 0 : i32
    return %c0_i32 : i32
  }
  func.func @transform_1(%arg0: i32) -> (i32, i32) {
    %c0_i32 = arith.constant 0 : i32
    %c0_i32_0 = arith.constant 0 : i32
    return %arg0, %c0_i32 : i32, i32
  }
  func.func @transform_2(%arg0: i32) -> (i32, i32) {
    %c0_i32 = arith.constant 0 : i32
    %c0_i32_0 = arith.constant 0 : i32
    return %arg0, %c0_i32 : i32, i32
  }
}

</mosaic_0001>

<bundles_post_ra>
// kernel: tpu_custom_call.1
= control target key start
LH: loop header
LB: loop body
LE: loop exit
PB: predicated region body
PF: predicated region fallthrough
CT: control target
= control target key end

     0   :  { %s2130_s0 = inlined_call_operand.<no memory space> [shape: f32[1], index: 0, kind: input, shape index: {}]   ;;  %s2131_s1 = inlined_call_operand.hbm [shape: f32[32,32768], index: 1, kind: input, shape index: {}]   ;;  %s2132_s2 = inlined_call_operand.hbm [shape: f32[32,32768], index: 2, kind: output, shape index: {}]  }
   0x1   :  { %7 = sst [smem:[#allocation2]] %s2130_s0 }
   0x2   :  { %8 = vsyncpa [#allocation4], 0 }
   0x3   :  { %10 = vsyncpa [#allocation4 + $0x1], 0 }
   0x4   :  { %11 = vsyncpa [#allocation5], 0 }
   0x5   :  { %13 = vsyncpa [#allocation5 + $0x1], 0  ;;  %s1196_s11 = smov 0   ;;  %s1198_s12 = smov 0  }
   0x6   :  { %s1200_s13 = smov 0   ;;  %s1202_s14 = smov 0  }
   0x7 LB: > { %s1217_s0 = sadd.s32 4294967295, %s1174_s14   ;;  %s1016_s15 = sadd.s32 4294967294, %s1174_s14   ;;  %s1174_s14 = sphi %s1202_s14, %s2146_s14   ;;  %s1170_s13 = sphi %s1200_s13, %s2145_s13   ;;  %s1166_s12 = sphi %s1198_s12, %s2144_s12   ;;  %s1162_s11 = sphi %s1196_s11, %s2143_s11  }
   0x8   : > { %s1221_s16 = sadd.s32 1, %s1174_s14   ;;  %s47_s17 = sadd.s32 1, %s1170_s13 }
   0x9   : > { %s44_s18 = ssub.s32 %s1174_s14, %s1221_s16  ;;  %p54_p0 = scmp.ne.s32.totalorder %s1170_s13, %s1166_s12 }
   0xa   : > { %p45_p1 = scmp.eq.s32.totalorder %s44_s18, 0  ;;  %p55_p2 = scmp.eq.s32.totalorder %s1174_s14, 0 }
   0xb   : > { %p60_p3 = scmp.ne.s32.totalorder %s1166_s12, %s1162_s11  ;;  %p61_p4 = scmp.eq.s32.totalorder %s1217_s0, 0 }
   0xc   : > { %s1233_s19 = scalar_select %p45_p1, %s1170_s13, %s47_s17  }
   0xd   : > { %p1235_p5 = por %p55_p2, %p54_p0  ;;  %p1239_p6 = por %p61_p4, %p60_p3 }
   0xe   : > { %p84_p7 = scmp.eq.s32.totalorder %s1217_s0, 3  ;;  %p90_p8 = scmp.eq.s32.totalorder %s1016_s15, 3 }
   0xf   : > { %p1044_p9 = scmp.lt.s32.totalorder %s1174_s14, 4  ;;  %s113_s24 = sand.u32 1, %s1170_s13  }
  0x10   : > { %p1245_p10 = por %p84_p7, %p54_p0  ;;  %p1249_p11 = por %p90_p8, %p60_p3 }
  0x11   : > { %s1030_s25 = sshll.u32 %s1174_s14, 15  ;;  %s1019_s26 = sshll.u32 %s113_s24, 11 }
  0x12   : > { %s2136_s22 = scalar_select %p1245_p10, 1, 0 }
  0x13   : > { %s2137_s23 = scalar_select %p1249_p11, 1, 0 }
  0x14   : > { %s1258_s29 = scalar_lea.hbm %s2131_s1, %s1030_s25  ;;  %s117_s30 = scalar_lea.vmem [#allocation3], %s1019_s26 }
  0x15   : > { %s125_s3 = sshll.u32 %s117_s30, 4  ;;  %p1262_p12 = pnand %p1044_p9, %p1235_p5  ;;  %s1266_s3 = int_to_ptr.vmem [resolvable:$true] %s125_s3 }
  0x16   : > { %s114_s5 = scalar_lea.sflag [#allocation4], %s113_s24  ;;  %s1078_s6 = scalar_lea.hbm %s1258_s29, 32768 }
  0x17   : > { %p1079_p1 = scmp.ne.s32.totalorder %s1258_s29, %s1078_s6  ;;  %p1080_p2 = pneg %p1262_p12 }
  0x18   : > { %s1083_s9 = scalar_lea.hbm %s2131_s1, 131072  ;;  %p1084_p5 = scmp.lt.u32.totalorder %s1258_s29, %s2131_s1 }
  0x19   : > { %p1081_p3 = pnand %p1080_p2, %p1079_p1  ;;  %p1085_p7 = scmp.lt.u32.totalorder %s1083_s9, %s1078_s6 }
  0x1a   : > { %p1087_p9 = scmp.lt.u32.totalorder %s1078_s6, %s1258_s29 }
  0x1b   : > { %p1082_p4 = pneg %p1081_p3  ;;  %p1086_p8 = por %p1085_p7, %p1084_p5 }
  0x1d   : > { %p1088_p13 = por %p1087_p9, %p1086_p8 }
  0x1f   : > { %p1089_p0 = pnand %p1088_p13, %p1082_p4 }
  0x21   : > { %1092 = shalt.err (!%p1089_p0)
}
  0x22   : > { %s1093_s17 = scalar_lea.vmem %s1266_s3, 32768  ;;  %s1176_s18 = smov [#allocation3]  }
  0x23   : > { %p1094_p1 = scmp.ne.s32.totalorder %s1266_s3, %s1093_s17  ;;  %s1098_s20 = sshll.u32 %s1176_s18, 4  ;;  %s1099_s20 = int_to_ptr.vmem [resolvable:$false] %s1098_s20 }
  0x24   : > { %s1100_s24 = scalar_lea.vmem %s1099_s20, 65536  ;;  %p1101_p10 = scmp.lt.s32.totalorder %s1266_s3, %s1099_s20 }
  0x25   : > { %p1096_p3 = pnand %p1094_p1, %p1080_p2  ;;  %p1102_p5 = scmp.lt.s32.totalorder %s1100_s24, %s1093_s17 }
  0x27   : > { %p1097_p11 = pneg %p1096_p3  ;;  %p1103_p7 = por %p1102_p5, %p1101_p10 }
  0x29   : > { %p1104_p8 = pnand %p1103_p7, %p1097_p11 }
  0x2b   : > { %1107 = shalt.err (!%p1104_p8)
}
  0x2c   : > { %1039 = dma.hbm_to_vmem [thread:$0]  (!%p1262_p12), %s1258_s29, 32768, %s1266_s3, %s114_s5  }
  0x2d   : > { %p2139_p13 = scmp.lt.s32.totalorder %s1174_s14, 5  ;;  %p2140_p0 = scmp.ge.s32.totalorder %s1174_s14, 1 }
  0x2f   : > { %p131_p2 = pnand %p2140_p0, %p2139_p13 }
  0x30   : > { %s1300_s25 = sand.u32 (!%p131_p2), 1, %s1166_s12  }
  0x31   : > { %134 = sbr.rel (%p131_p2) target bundleno = 207 (0xcf), region = 28  ;;  %s1023_s26 = sshll.u32 (!%p131_p2), %s1300_s25, 11 }
  0x32   : > { %s137_s27 = scalar_lea.sflag (!%p131_p2), [#allocation4], %s1300_s25  ;;  %s1304_s28 = scalar_lea.vmem (!%p131_p2), [#allocation3], %s1023_s26 }
  0x38   : > { %1153 = dma.done.wait (%p1239_p6), %s137_s27, 32768  }
  0x39   : > { %1155 = vsyncadd (%p1239_p6), %s137_s27, 4294934528  ;;  %s417_s29 = sld [smem:[#allocation2]]  ;;  %v161_v0 = vld [vmem:[%s1304_s28] sm:$0xff]  ;;  %v162_v2 = vld [vmem:[%s1304_s28 + $0x8] sm:$0xff]  ;;  %s1327_s21 = scalar_lea.vmem [#allocation6], %s1023_s26 }
  0x3a   : > { %v163_v3 = vld [vmem:[%s1304_s28 + $0x10] sm:$0xff]  ;;  %v164_v7 = vld [vmem:[%s1304_s28 + $0x18] sm:$0xff]  ;;  %v165_v8 = vld [vmem:[%s1304_s28 + $0x20] sm:$0xff]  ;;  %s1031_s30 = sshll.u32 %s1217_s0, 15  ;;  %s946_s3 = sshll.u32 %s1327_s21, 4  ;;  %s2085_s3 = int_to_ptr.vmem [resolvable:$true] %s946_s3 }
  0x3b   : > { %v166_v9 = vld [vmem:[%s1304_s28 + $0x28] sm:$0xff]  ;;  %v167_v13 = vld [vmem:[%s1304_s28 + $0x30] sm:$0xff]  ;;  %v168_v14 = vld [vmem:[%s1304_s28 + $0x38] sm:$0xff]  ;;  %s2083_s5 = scalar_lea.hbm %s2132_s2, %s1031_s30  ;;  %s932_s6 = scalar_lea.sflag [#allocation5], %s1300_s25 }
  0x3c   : > { %v169_v15 = vld [vmem:[%s1304_s28 + $0x40] sm:$0xff]  ;;  %v170_v19 = vld [vmem:[%s1304_s28 + $0x48] sm:$0xff]  ;;  %v171_v20 = vld [vmem:[%s1304_s28 + $0x50] sm:$0xff]  ;;  %s1108_s7 = scalar_lea.vmem %s2085_s3, 32768  ;;  %p2141_p10 = scmp.ne.s32.totalorder %s2136_s22, 0 }
  0x3d   : > { %v172_v21 = vld [vmem:[%s1304_s28 + $0x58] sm:$0xff]  ;;  %v173_v25 = vld [vmem:[%s1304_s28 + $0x60] sm:$0xff]  ;;  %v174_v26 = vld [vmem:[%s1304_s28 + $0x68] sm:$0xff]  ;;  %p1109_p6 = scmp.ne.s32.totalorder %s2085_s3, %s1108_s7  ;;  %s1177_s8 = smov [#allocation6]  }
  0x3e   : > { %v175_v27 = vld [vmem:[%s1304_s28 + $0x70] sm:$0xff]  ;;  %v176_v31 = vld [vmem:[%s1304_s28 + $0x78] sm:$0xff]  ;;  %v177_v32 = vld [vmem:[%s1304_s28 + $0x80] sm:$0xff]  ;;  %s1112_s9 = sshll.u32 %s1177_s8, 4  ;;  %s1113_s9 = int_to_ptr.vmem [resolvable:$false] %s1112_s9 }
  0x3f   : > { %v1311_v1 = vstv %s417_s29  ;;  %v178_v33 = vld [vmem:[%s1304_s28 + $0x88] sm:$0xff]  ;;  %v179_v37 = vld [vmem:[%s1304_s28 + $0x90] sm:$0xff]  ;;  %v180_v38 = vld [vmem:[%s1304_s28 + $0x98] sm:$0xff]  ;;  %p1110_p11 = pnand %p1109_p6, %p2141_p10  ;;  %s1114_s10 = scalar_lea.vmem %s1113_s9, 65536 }
  0x40   : > { %v419_v4 = vmul.f32 %v1311_v1, %v161_v0  ;;  %v420_v5 = vmul.f32 %v1311_v1, %v162_v2  ;;  %v421_v6 = vmul.f32 %v1311_v1, %v163_v3  ;;  %v422_v10 = vmul.f32 %v1311_v1, %v164_v7  ;;  %v181_v39 = vld [vmem:[%s1304_s28 + $0xa0] sm:$0xff]  ;;  %v182_v43 = vld [vmem:[%s1304_s28 + $0xa8] sm:$0xff]  ;;  %v183_v44 = vld [vmem:[%s1304_s28 + $0xb0] sm:$0xff]  ;;  %p1115_p4 = scmp.lt.s32.totalorder %s2085_s3, %s1113_s9  ;;  %p1116_p9 = scmp.lt.s32.totalorder %s1114_s10, %s1108_s7 }
  0x41   : > { %v423_v11 = vmul.f32 %v1311_v1, %v165_v8  ;;  %v424_v12 = vmul.f32 %v1311_v1, %v166_v9  ;;  %v425_v16 = vmul.f32 %v1311_v1, %v167_v13  ;;  %v426_v17 = vmul.f32 %v1311_v1, %v168_v14  ;;  %v184_v45 = vld [vmem:[%s1304_s28 + $0xb8] sm:$0xff]  ;;  %v185_v49 = vld [vmem:[%s1304_s28 + $0xc0] sm:$0xff]  ;;  %v186_v50 = vld [vmem:[%s1304_s28 + $0xc8] sm:$0xff]  ;;  %p1111_p12 = pneg %p1110_p11 }
  0x42   : > { %675 = vst [vmem:[%s1327_s21] sm:$0xff] %v419_v4  ;;  %676 = vst [vmem:[%s1327_s21 + $0x8] sm:$0xff] %v420_v5  ;;  %v427_v18 = vmul.f32 %v1311_v1, %v169_v15  ;;  %v428_v22 = vmul.f32 %v1311_v1, %v170_v19  ;;  %v429_v23 = vmul.f32 %v1311_v1, %v171_v20  ;;  %v187_v51 = vld [vmem:[%s1304_s28 + $0xd0] sm:$0xff]  ;;  %v188_v55 = vld [vmem:[%s1304_s28 + $0xd8] sm:$0xff]  ;;  %p1117_p1 = por %p1116_p9, %p1115_p4 }
  0x43   : > { %677 = vst [vmem:[%s1327_s21 + $0x10] sm:$0xff] %v421_v6  ;;  %678 = vst [vmem:[%s1327_s21 + $0x18] sm:$0xff] %v422_v10  ;;  %v430_v24 = vmul.f32 %v1311_v1, %v172_v21  ;;  %v431_v28 = vmul.f32 %v1311_v1, %v173_v25  ;;  %v432_v29 = vmul.f32 %v1311_v1, %v174_v26  ;;  %v189_v56 = vld [vmem:[%s1304_s28 + $0xe0] sm:$0xff]  ;;  %v190_v57 = vld [vmem:[%s1304_s28 + $0xe8] sm:$0xff] }
  0x44   : > { %679 = vst [vmem:[%s1327_s21 + $0x20] sm:$0xff] %v423_v11  ;;  %680 = vst [vmem:[%s1327_s21 + $0x28] sm:$0xff] %v424_v12  ;;  %v433_v30 = vmul.f32 %v1311_v1, %v175_v27  ;;  %v434_v34 = vmul.f32 %v1311_v1, %v176_v31  ;;  %v435_v35 = vmul.f32 %v1311_v1, %v177_v32  ;;  %v191_v61 = vld [vmem:[%s1304_s28 + $0xf0] sm:$0xff]  ;;  %v192_v62 = vld [vmem:[%s1304_s28 + $0xf8] sm:$0xff]  ;;  %p1118_p3 = pnand %p1117_p1, %p1111_p12 }
  0x45   : > { %681 = vst [vmem:[%s1327_s21 + $0x30] sm:$0xff] %v425_v16  ;;  %682 = vst [vmem:[%s1327_s21 + $0x38] sm:$0xff] %v426_v17  ;;  %v436_v36 = vmul.f32 %v1311_v1, %v178_v33  ;;  %v437_v40 = vmul.f32 %v1311_v1, %v179_v37  ;;  %v438_v41 = vmul.f32 %v1311_v1, %v180_v38  ;;  %v193_v63 = vld [vmem:[%s1304_s28 + $0x100] sm:$0xff]  ;;  %v194_v4 = vld [vmem:[%s1304_s28 + $0x108] sm:$0xff] }
  0x46   : > { %683 = vst [vmem:[%s1327_s21 + $0x40] sm:$0xff] %v427_v18  ;;  %684 = vst [vmem:[%s1327_s21 + $0x48] sm:$0xff] %v428_v22  ;;  %v439_v42 = vmul.f32 %v1311_v1, %v181_v39  ;;  %v440_v46 = vmul.f32 %v1311_v1, %v182_v43  ;;  %v441_v47 = vmul.f32 %v1311_v1, %v183_v44  ;;  %v195_v5 = vld [vmem:[%s1304_s28 + $0x110] sm:$0xff]  ;;  %v196_v6 = vld [vmem:[%s1304_s28 + $0x118] sm:$0xff] }
  0x47   : > { %685 = vst [vmem:[%s1327_s21 + $0x50] sm:$0xff] %v429_v23  ;;  %686 = vst [vmem:[%s1327_s21 + $0x58] sm:$0xff] %v430_v24  ;;  %v442_v48 = vmul.f32 %v1311_v1, %v184_v45  ;;  %v443_v52 = vmul.f32 %v1311_v1, %v185_v49  ;;  %v444_v53 = vmul.f32 %v1311_v1, %v186_v50  ;;  %v197_v10 = vld [vmem:[%s1304_s28 + $0x120] sm:$0xff]  ;;  %v198_v11 = vld [vmem:[%s1304_s28 + $0x128] sm:$0xff] }
  0x48   : > { %687 = vst [vmem:[%s1327_s21 + $0x60] sm:$0xff] %v431_v28  ;;  %688 = vst [vmem:[%s1327_s21 + $0x68] sm:$0xff] %v432_v29  ;;  %v445_v54 = vmul.f32 %v1311_v1, %v187_v51  ;;  %v446_v58 = vmul.f32 %v1311_v1, %v188_v55  ;;  %v447_v59 = vmul.f32 %v1311_v1, %v189_v56  ;;  %v199_v12 = vld [vmem:[%s1304_s28 + $0x130] sm:$0xff]  ;;  %v200_v16 = vld [vmem:[%s1304_s28 + $0x138] sm:$0xff] }
  0x49   : > { %689 = vst [vmem:[%s1327_s21 + $0x70] sm:$0xff] %v433_v30  ;;  %690 = vst [vmem:[%s1327_s21 + $0x78] sm:$0xff] %v434_v34  ;;  %v448_v60 = vmul.f32 %v1311_v1, %v190_v57  ;;  %v449_v0 = vmul.f32 %v1311_v1, %v191_v61  ;;  %v450_v2 = vmul.f32 %v1311_v1, %v192_v62  ;;  %v201_v17 = vld [vmem:[%s1304_s28 + $0x140] sm:$0xff]  ;;  %v202_v18 = vld [vmem:[%s1304_s28 + $0x148] sm:$0xff] }
  0x4a   : > { %691 = vst [vmem:[%s1327_s21 + $0x80] sm:$0xff] %v435_v35  ;;  %692 = vst [vmem:[%s1327_s21 + $0x88] sm:$0xff] %v436_v36  ;;  %v451_v3 = vmul.f32 %v1311_v1, %v193_v63  ;;  %v452_v7 = vmul.f32 %v1311_v1, %v194_v4  ;;  %v453_v8 = vmul.f32 %v1311_v1, %v195_v5  ;;  %v203_v22 = vld [vmem:[%s1304_s28 + $0x150] sm:$0xff]  ;;  %v204_v23 = vld [vmem:[%s1304_s28 + $0x158] sm:$0xff] }
  0x4b   : > { %693 = vst [vmem:[%s1327_s21 + $0x90] sm:$0xff] %v437_v40  ;;  %694 = vst [vmem:[%s1327_s21 + $0x98] sm:$0xff] %v438_v41  ;;  %v454_v9 = vmul.f32 %v1311_v1, %v196_v6  ;;  %v455_v13 = vmul.f32 %v1311_v1, %v197_v10  ;;  %v456_v14 = vmul.f32 %v1311_v1, %v198_v11  ;;  %v205_v24 = vld [vmem:[%s1304_s28 + $0x160] sm:$0xff]  ;;  %v206_v28 = vld [vmem:[%s1304_s28 + $0x168] sm:$0xff] }
  0x4c   : > { %695 = vst [vmem:[%s1327_s21 + $0xa0] sm:$0xff] %v439_v42  ;;  %696 = vst [vmem:[%s1327_s21 + $0xa8] sm:$0xff] %v440_v46  ;;  %v457_v15 = vmul.f32 %v1311_v1, %v199_v12  ;;  %v458_v19 = vmul.f32 %v1311_v1, %v200_v16  ;;  %v459_v20 = vmul.f32 %v1311_v1, %v201_v17  ;;  %v207_v29 = vld [vmem:[%s1304_s28 + $0x170] sm:$0xff]  ;;  %v208_v30 = vld [vmem:[%s1304_s28 + $0x178] sm:$0xff] }
  0x4d   : > { %697 = vst [vmem:[%s1327_s21 + $0xb0] sm:$0xff] %v441_v47  ;;  %698 = vst [vmem:[%s1327_s21 + $0xb8] sm:$0xff] %v442_v48  ;;  %v460_v21 = vmul.f32 %v1311_v1, %v202_v18  ;;  %v461_v25 = vmul.f32 %v1311_v1, %v203_v22  ;;  %v462_v26 = vmul.f32 %v1311_v1, %v204_v23  ;;  %v209_v34 = vld [vmem:[%s1304_s28 + $0x180] sm:$0xff]  ;;  %v210_v35 = vld [vmem:[%s1304_s28 + $0x188] sm:$0xff] }
  0x4e   : > { %699 = vst [vmem:[%s1327_s21 + $0xc0] sm:$0xff] %v443_v52  ;;  %700 = vst [vmem:[%s1327_s21 + $0xc8] sm:$0xff] %v444_v53  ;;  %v463_v27 = vmul.f32 %v1311_v1, %v205_v24  ;;  %v464_v31 = vmul.f32 %v1311_v1, %v206_v28  ;;  %v465_v32 = vmul.f32 %v1311_v1, %v207_v29  ;;  %v211_v36 = vld [vmem:[%s1304_s28 + $0x190] sm:$0xff]  ;;  %v212_v40 = vld [vmem:[%s1304_s28 + $0x198] sm:$0xff] }
  0x4f   : > { %701 = vst [vmem:[%s1327_s21 + $0xd0] sm:$0xff] %v445_v54  ;;  %702 = vst [vmem:[%s1327_s21 + $0xd8] sm:$0xff] %v446_v58  ;;  %v466_v33 = vmul.f32 %v1311_v1, %v208_v30  ;;  %v467_v37 = vmul.f32 %v1311_v1, %v209_v34  ;;  %v468_v38 = vmul.f32 %v1311_v1, %v210_v35  ;;  %v213_v41 = vld [vmem:[%s1304_s28 + $0x1a0] sm:$0xff]  ;;  %v214_v42 = vld [vmem:[%s1304_s28 + $0x1a8] sm:$0xff] }
  0x50   : > { %703 = vst [vmem:[%s1327_s21 + $0xe0] sm:$0xff] %v447_v59  ;;  %704 = vst [vmem:[%s1327_s21 + $0xe8] sm:$0xff] %v448_v60  ;;  %v469_v39 = vmul.f32 %v1311_v1, %v211_v36  ;;  %v470_v43 = vmul.f32 %v1311_v1, %v212_v40  ;;  %v471_v44 = vmul.f32 %v1311_v1, %v213_v41  ;;  %v215_v46 = vld [vmem:[%s1304_s28 + $0x1b0] sm:$0xff]  ;;  %v216_v47 = vld [vmem:[%s1304_s28 + $0x1b8] sm:$0xff] }
  0x51   : > { %705 = vst [vmem:[%s1327_s21 + $0xf0] sm:$0xff] %v449_v0  ;;  %706 = vst [vmem:[%s1327_s21 + $0xf8] sm:$0xff] %v450_v2  ;;  %v472_v45 = vmul.f32 %v1311_v1, %v214_v42  ;;  %v217_v48 = vld [vmem:[%s1304_s28 + $0x1c0] sm:$0xff]  ;;  %v473_v49 = vmul.f32 %v1311_v1, %v215_v46  ;;  %v474_v50 = vmul.f32 %v1311_v1, %v216_v47  ;;  %v218_v52 = vld [vmem:[%s1304_s28 + $0x1c8] sm:$0xff] }
  0x52   : > { %707 = vst [vmem:[%s1327_s21 + $0x100] sm:$0xff] %v451_v3  ;;  %708 = vst [vmem:[%s1327_s21 + $0x108] sm:$0xff] %v452_v7  ;;  %v475_v51 = vmul.f32 %v1311_v1, %v217_v48  ;;  %v219_v53 = vld [vmem:[%s1304_s28 + $0x1d0] sm:$0xff]  ;;  %v220_v54 = vld [vmem:[%s1304_s28 + $0x1d8] sm:$0xff]  ;;  %v476_v55 = vmul.f32 %v1311_v1, %v218_v52 }
  0x53   : > { %709 = vst [vmem:[%s1327_s21 + $0x110] sm:$0xff] %v453_v8  ;;  %710 = vst [vmem:[%s1327_s21 + $0x118] sm:$0xff] %v454_v9  ;;  %v477_v56 = vmul.f32 %v1311_v1, %v219_v53  ;;  %v478_v57 = vmul.f32 %v1311_v1, %v220_v54  ;;  %v221_v58 = vld [vmem:[%s1304_s28 + $0x1e0] sm:$0xff]  ;;  %v222_v59 = vld [vmem:[%s1304_s28 + $0x1e8] sm:$0xff] }
  0x54   : > { %711 = vst [vmem:[%s1327_s21 + $0x120] sm:$0xff] %v455_v13  ;;  %712 = vst [vmem:[%s1327_s21 + $0x128] sm:$0xff] %v456_v14  ;;  %v223_v60 = vld [vmem:[%s1304_s28 + $0x1f0] sm:$0xff]  ;;  %v479_v61 = vmul.f32 %v1311_v1, %v221_v58  ;;  %v480_v62 = vmul.f32 %v1311_v1, %v222_v59  ;;  %v224_v0 = vld [vmem:[%s1304_s28 + $0x1f8] sm:$0xff] }
  0x55   : > { %713 = vst [vmem:[%s1327_s21 + $0x130] sm:$0xff] %v457_v15  ;;  %714 = vst [vmem:[%s1327_s21 + $0x138] sm:$0xff] %v458_v19  ;;  %v481_v63 = vmul.f32 %v1311_v1, %v223_v60  ;;  %v225_v2 = vld [vmem:[%s1304_s28 + $0x200] sm:$0xff]  ;;  %v226_v3 = vld [vmem:[%s1304_s28 + $0x208] sm:$0xff]  ;;  %v482_v4 = vmul.f32 %v1311_v1, %v224_v0 }
  0x56   : > { %715 = vst [vmem:[%s1327_s21 + $0x140] sm:$0xff] %v459_v20  ;;  %716 = vst [vmem:[%s1327_s21 + $0x148] sm:$0xff] %v460_v21  ;;  %v483_v5 = vmul.f32 %v1311_v1, %v225_v2  ;;  %v484_v6 = vmul.f32 %v1311_v1, %v226_v3  ;;  %v227_v7 = vld [vmem:[%s1304_s28 + $0x210] sm:$0xff]  ;;  %v228_v8 = vld [vmem:[%s1304_s28 + $0x218] sm:$0xff] }
  0x57   : > { %717 = vst [vmem:[%s1327_s21 + $0x150] sm:$0xff] %v461_v25  ;;  %718 = vst [vmem:[%s1327_s21 + $0x158] sm:$0xff] %v462_v26  ;;  %v229_v9 = vld [vmem:[%s1304_s28 + $0x220] sm:$0xff]  ;;  %v485_v10 = vmul.f32 %v1311_v1, %v227_v7  ;;  %v486_v11 = vmul.f32 %v1311_v1, %v228_v8  ;;  %v230_v13 = vld [vmem:[%s1304_s28 + $0x228] sm:$0xff] }
  0x58   : > { %719 = vst [vmem:[%s1327_s21 + $0x160] sm:$0xff] %v463_v27  ;;  %720 = vst [vmem:[%s1327_s21 + $0x168] sm:$0xff] %v464_v31  ;;  %v487_v12 = vmul.f32 %v1311_v1, %v229_v9  ;;  %v231_v14 = vld [vmem:[%s1304_s28 + $0x230] sm:$0xff]  ;;  %v232_v15 = vld [vmem:[%s1304_s28 + $0x238] sm:$0xff]  ;;  %v488_v16 = vmul.f32 %v1311_v1, %v230_v13 }
  0x59   : > { %721 = vst [vmem:[%s1327_s21 + $0x170] sm:$0xff] %v465_v32  ;;  %722 = vst [vmem:[%s1327_s21 + $0x178] sm:$0xff] %v466_v33  ;;  %v489_v17 = vmul.f32 %v1311_v1, %v231_v14  ;;  %v490_v18 = vmul.f32 %v1311_v1, %v232_v15  ;;  %v233_v19 = vld [vmem:[%s1304_s28 + $0x240] sm:$0xff]  ;;  %v234_v20 = vld [vmem:[%s1304_s28 + $0x248] sm:$0xff] }
  0x5a   : > { %723 = vst [vmem:[%s1327_s21 + $0x180] sm:$0xff] %v467_v37  ;;  %724 = vst [vmem:[%s1327_s21 + $0x188] sm:$0xff] %v468_v38  ;;  %v235_v21 = vld [vmem:[%s1304_s28 + $0x250] sm:$0xff]  ;;  %v491_v22 = vmul.f32 %v1311_v1, %v233_v19  ;;  %v492_v23 = vmul.f32 %v1311_v1, %v234_v20  ;;  %v236_v25 = vld [vmem:[%s1304_s28 + $0x258] sm:$0xff] }
  0x5b   : > { %725 = vst [vmem:[%s1327_s21 + $0x190] sm:$0xff] %v469_v39  ;;  %726 = vst [vmem:[%s1327_s21 + $0x198] sm:$0xff] %v470_v43  ;;  %v493_v24 = vmul.f32 %v1311_v1, %v235_v21  ;;  %v237_v26 = vld [vmem:[%s1304_s28 + $0x260] sm:$0xff]  ;;  %v238_v27 = vld [vmem:[%s1304_s28 + $0x268] sm:$0xff]  ;;  %v494_v28 = vmul.f32 %v1311_v1, %v236_v25 }
  0x5c   : > { %727 = vst [vmem:[%s1327_s21 + $0x1a0] sm:$0xff] %v471_v44  ;;  %728 = vst [vmem:[%s1327_s21 + $0x1a8] sm:$0xff] %v472_v45  ;;  %v495_v29 = vmul.f32 %v1311_v1, %v237_v26  ;;  %v496_v30 = vmul.f32 %v1311_v1, %v238_v27  ;;  %v239_v31 = vld [vmem:[%s1304_s28 + $0x270] sm:$0xff]  ;;  %v240_v32 = vld [vmem:[%s1304_s28 + $0x278] sm:$0xff] }
  0x5d   : > { %729 = vst [vmem:[%s1327_s21 + $0x1b0] sm:$0xff] %v473_v49  ;;  %730 = vst [vmem:[%s1327_s21 + $0x1b8] sm:$0xff] %v474_v50  ;;  %v241_v33 = vld [vmem:[%s1304_s28 + $0x280] sm:$0xff]  ;;  %v497_v34 = vmul.f32 %v1311_v1, %v239_v31  ;;  %v498_v35 = vmul.f32 %v1311_v1, %v240_v32  ;;  %v242_v37 = vld [vmem:[%s1304_s28 + $0x288] sm:$0xff] }
  0x5e   : > { %731 = vst [vmem:[%s1327_s21 + $0x1c0] sm:$0xff] %v475_v51  ;;  %732 = vst [vmem:[%s1327_s21 + $0x1c8] sm:$0xff] %v476_v55  ;;  %v499_v36 = vmul.f32 %v1311_v1, %v241_v33  ;;  %v243_v38 = vld [vmem:[%s1304_s28 + $0x290] sm:$0xff]  ;;  %v244_v39 = vld [vmem:[%s1304_s28 + $0x298] sm:$0xff]  ;;  %v500_v40 = vmul.f32 %v1311_v1, %v242_v37 }
  0x5f   : > { %733 = vst [vmem:[%s1327_s21 + $0x1d0] sm:$0xff] %v477_v56  ;;  %734 = vst [vmem:[%s1327_s21 + $0x1d8] sm:$0xff] %v478_v57  ;;  %v501_v41 = vmul.f32 %v1311_v1, %v243_v38  ;;  %v502_v42 = vmul.f32 %v1311_v1, %v244_v39  ;;  %v245_v43 = vld [vmem:[%s1304_s28 + $0x2a0] sm:$0xff]  ;;  %v246_v44 = vld [vmem:[%s1304_s28 + $0x2a8] sm:$0xff] }
  0x60   : > { %735 = vst [vmem:[%s1327_s21 + $0x1e0] sm:$0xff] %v479_v61  ;;  %736 = vst [vmem:[%s1327_s21 + $0x1e8] sm:$0xff] %v480_v62  ;;  %v247_v45 = vld [vmem:[%s1304_s28 + $0x2b0] sm:$0xff]  ;;  %v503_v46 = vmul.f32 %v1311_v1, %v245_v43  ;;  %v504_v47 = vmul.f32 %v1311_v1, %v246_v44  ;;  %v248_v49 = vld [vmem:[%s1304_s28 + $0x2b8] sm:$0xff] }
  0x61   : > { %737 = vst [vmem:[%s1327_s21 + $0x1f0] sm:$0xff] %v481_v63  ;;  %738 = vst [vmem:[%s1327_s21 + $0x1f8] sm:$0xff] %v482_v4  ;;  %v505_v48 = vmul.f32 %v1311_v1, %v247_v45  ;;  %v249_v50 = vld [vmem:[%s1304_s28 + $0x2c0] sm:$0xff]  ;;  %v250_v51 = vld [vmem:[%s1304_s28 + $0x2c8] sm:$0xff]  ;;  %v506_v52 = vmul.f32 %v1311_v1, %v248_v49 }
  0x62   : > { %739 = vst [vmem:[%s1327_s21 + $0x200] sm:$0xff] %v483_v5  ;;  %740 = vst [vmem:[%s1327_s21 + $0x208] sm:$0xff] %v484_v6  ;;  %v507_v53 = vmul.f32 %v1311_v1, %v249_v50  ;;  %v508_v54 = vmul.f32 %v1311_v1, %v250_v51  ;;  %v251_v55 = vld [vmem:[%s1304_s28 + $0x2d0] sm:$0xff]  ;;  %v252_v56 = vld [vmem:[%s1304_s28 + $0x2d8] sm:$0xff] }
  0x63   : > { %741 = vst [vmem:[%s1327_s21 + $0x210] sm:$0xff] %v485_v10  ;;  %742 = vst [vmem:[%s1327_s21 + $0x218] sm:$0xff] %v486_v11  ;;  %v253_v57 = vld [vmem:[%s1304_s28 + $0x2e0] sm:$0xff]  ;;  %v509_v58 = vmul.f32 %v1311_v1, %v251_v55  ;;  %v510_v59 = vmul.f32 %v1311_v1, %v252_v56  ;;  %v254_v61 = vld [vmem:[%s1304_s28 + $0x2e8] sm:$0xff] }
  0x64   : > { %743 = vst [vmem:[%s1327_s21 + $0x220] sm:$0xff] %v487_v12  ;;  %744 = vst [vmem:[%s1327_s21 + $0x228] sm:$0xff] %v488_v16  ;;  %v511_v60 = vmul.f32 %v1311_v1, %v253_v57  ;;  %v255_v62 = vld [vmem:[%s1304_s28 + $0x2f0] sm:$0xff]  ;;  %v256_v63 = vld [vmem:[%s1304_s28 + $0x2f8] sm:$0xff]  ;;  %v512_v0 = vmul.f32 %v1311_v1, %v254_v61 }
  0x65   : > { %745 = vst [vmem:[%s1327_s21 + $0x230] sm:$0xff] %v489_v17  ;;  %746 = vst [vmem:[%s1327_s21 + $0x238] sm:$0xff] %v490_v18  ;;  %v513_v2 = vmul.f32 %v1311_v1, %v255_v62  ;;  %v514_v3 = vmul.f32 %v1311_v1, %v256_v63  ;;  %v257_v4 = vld [vmem:[%s1304_s28 + $0x300] sm:$0xff]  ;;  %v258_v5 = vld [vmem:[%s1304_s28 + $0x308] sm:$0xff] }
  0x66   : > { %747 = vst [vmem:[%s1327_s21 + $0x240] sm:$0xff] %v491_v22  ;;  %748 = vst [vmem:[%s1327_s21 + $0x248] sm:$0xff] %v492_v23  ;;  %v259_v6 = vld [vmem:[%s1304_s28 + $0x310] sm:$0xff]  ;;  %v515_v7 = vmul.f32 %v1311_v1, %v257_v4  ;;  %v516_v8 = vmul.f32 %v1311_v1, %v258_v5  ;;  %v260_v10 = vld [vmem:[%s1304_s28 + $0x318] sm:$0xff] }
  0x67   : > { %749 = vst [vmem:[%s1327_s21 + $0x250] sm:$0xff] %v493_v24  ;;  %750 = vst [vmem:[%s1327_s21 + $0x258] sm:$0xff] %v494_v28  ;;  %v517_v9 = vmul.f32 %v1311_v1, %v259_v6  ;;  %v261_v11 = vld [vmem:[%s1304_s28 + $0x320] sm:$0xff]  ;;  %v262_v12 = vld [vmem:[%s1304_s28 + $0x328] sm:$0xff]  ;;  %v518_v13 = vmul.f32 %v1311_v1, %v260_v10 }
  0x68   : > { %751 = vst [vmem:[%s1327_s21 + $0x260] sm:$0xff] %v495_v29  ;;  %752 = vst [vmem:[%s1327_s21 + $0x268] sm:$0xff] %v496_v30  ;;  %v519_v14 = vmul.f32 %v1311_v1, %v261_v11  ;;  %v520_v15 = vmul.f32 %v1311_v1, %v262_v12  ;;  %v263_v16 = vld [vmem:[%s1304_s28 + $0x330] sm:$0xff]  ;;  %v264_v17 = vld [vmem:[%s1304_s28 + $0x338] sm:$0xff] }
  0x69   : > { %753 = vst [vmem:[%s1327_s21 + $0x270] sm:$0xff] %v497_v34  ;;  %754 = vst [vmem:[%s1327_s21 + $0x278] sm:$0xff] %v498_v35  ;;  %v265_v18 = vld [vmem:[%s1304_s28 + $0x340] sm:$0xff]  ;;  %v521_v19 = vmul.f32 %v1311_v1, %v263_v16  ;;  %v522_v20 = vmul.f32 %v1311_v1, %v264_v17  ;;  %v266_v22 = vld [vmem:[%s1304_s28 + $0x348] sm:$0xff] }
  0x6a   : > { %755 = vst [vmem:[%s1327_s21 + $0x280] sm:$0xff] %v499_v36  ;;  %756 = vst [vmem:[%s1327_s21 + $0x288] sm:$0xff] %v500_v40  ;;  %v523_v21 = vmul.f32 %v1311_v1, %v265_v18  ;;  %v267_v23 = vld [vmem:[%s1304_s28 + $0x350] sm:$0xff]  ;;  %v268_v24 = vld [vmem:[%s1304_s28 + $0x358] sm:$0xff]  ;;  %v524_v25 = vmul.f32 %v1311_v1, %v266_v22 }
  0x6b   : > { %757 = vst [vmem:[%s1327_s21 + $0x290] sm:$0xff] %v501_v41  ;;  %758 = vst [vmem:[%s1327_s21 + $0x298] sm:$0xff] %v502_v42  ;;  %v525_v26 = vmul.f32 %v1311_v1, %v267_v23  ;;  %v526_v27 = vmul.f32 %v1311_v1, %v268_v24  ;;  %v269_v28 = vld [vmem:[%s1304_s28 + $0x360] sm:$0xff]  ;;  %v270_v29 = vld [vmem:[%s1304_s28 + $0x368] sm:$0xff] }
  0x6c   : > { %759 = vst [vmem:[%s1327_s21 + $0x2a0] sm:$0xff] %v503_v46  ;;  %760 = vst [vmem:[%s1327_s21 + $0x2a8] sm:$0xff] %v504_v47  ;;  %v271_v30 = vld [vmem:[%s1304_s28 + $0x370] sm:$0xff]  ;;  %v527_v31 = vmul.f32 %v1311_v1, %v269_v28  ;;  %v528_v32 = vmul.f32 %v1311_v1, %v270_v29  ;;  %v272_v34 = vld [vmem:[%s1304_s28 + $0x378] sm:$0xff] }
  0x6d   : > { %761 = vst [vmem:[%s1327_s21 + $0x2b0] sm:$0xff] %v505_v48  ;;  %762 = vst [vmem:[%s1327_s21 + $0x2b8] sm:$0xff] %v506_v52  ;;  %v529_v33 = vmul.f32 %v1311_v1, %v271_v30  ;;  %v273_v35 = vld [vmem:[%s1304_s28 + $0x380] sm:$0xff]  ;;  %v274_v36 = vld [vmem:[%s1304_s28 + $0x388] sm:$0xff]  ;;  %v530_v37 = vmul.f32 %v1311_v1, %v272_v34 }
  0x6e   : > { %763 = vst [vmem:[%s1327_s21 + $0x2c0] sm:$0xff] %v507_v53  ;;  %764 = vst [vmem:[%s1327_s21 + $0x2c8] sm:$0xff] %v508_v54  ;;  %v531_v38 = vmul.f32 %v1311_v1, %v273_v35  ;;  %v532_v39 = vmul.f32 %v1311_v1, %v274_v36  ;;  %v275_v40 = vld [vmem:[%s1304_s28 + $0x390] sm:$0xff]  ;;  %v276_v41 = vld [vmem:[%s1304_s28 + $0x398] sm:$0xff] }
  0x6f   : > { %765 = vst [vmem:[%s1327_s21 + $0x2d0] sm:$0xff] %v509_v58  ;;  %766 = vst [vmem:[%s1327_s21 + $0x2d8] sm:$0xff] %v510_v59  ;;  %v277_v42 = vld [vmem:[%s1304_s28 + $0x3a0] sm:$0xff]  ;;  %v533_v43 = vmul.f32 %v1311_v1, %v275_v40  ;;  %v534_v44 = vmul.f32 %v1311_v1, %v276_v41  ;;  %v278_v46 = vld [vmem:[%s1304_s28 + $0x3a8] sm:$0xff] }
  0x70   : > { %767 = vst [vmem:[%s1327_s21 + $0x2e0] sm:$0xff] %v511_v60  ;;  %768 = vst [vmem:[%s1327_s21 + $0x2e8] sm:$0xff] %v512_v0  ;;  %v535_v45 = vmul.f32 %v1311_v1, %v277_v42  ;;  %v279_v47 = vld [vmem:[%s1304_s28 + $0x3b0] sm:$0xff]  ;;  %v280_v48 = vld [vmem:[%s1304_s28 + $0x3b8] sm:$0xff]  ;;  %v536_v49 = vmul.f32 %v1311_v1, %v278_v46 }
  0x71   : > { %769 = vst [vmem:[%s1327_s21 + $0x2f0] sm:$0xff] %v513_v2  ;;  %770 = vst [vmem:[%s1327_s21 + $0x2f8] sm:$0xff] %v514_v3  ;;  %v537_v50 = vmul.f32 %v1311_v1, %v279_v47  ;;  %v538_v51 = vmul.f32 %v1311_v1, %v280_v48  ;;  %v281_v52 = vld [vmem:[%s1304_s28 + $0x3c0] sm:$0xff]  ;;  %v282_v53 = vld [vmem:[%s1304_s28 + $0x3c8] sm:$0xff] }
  0x72   : > { %771 = vst [vmem:[%s1327_s21 + $0x300] sm:$0xff] %v515_v7  ;;  %772 = vst [vmem:[%s1327_s21 + $0x308] sm:$0xff] %v516_v8  ;;  %v283_v54 = vld [vmem:[%s1304_s28 + $0x3d0] sm:$0xff]  ;;  %v539_v55 = vmul.f32 %v1311_v1, %v281_v52  ;;  %v540_v56 = vmul.f32 %v1311_v1, %v282_v53  ;;  %v284_v58 = vld [vmem:[%s1304_s28 + $0x3d8] sm:$0xff] }
  0x73   : > { %773 = vst [vmem:[%s1327_s21 + $0x310] sm:$0xff] %v517_v9  ;;  %774 = vst [vmem:[%s1327_s21 + $0x318] sm:$0xff] %v518_v13  ;;  %v541_v57 = vmul.f32 %v1311_v1, %v283_v54  ;;  %v285_v59 = vld [vmem:[%s1304_s28 + $0x3e0] sm:$0xff]  ;;  %v286_v60 = vld [vmem:[%s1304_s28 + $0x3e8] sm:$0xff]  ;;  %v542_v61 = vmul.f32 %v1311_v1, %v284_v58 }
  0x74   : > { %775 = vst [vmem:[%s1327_s21 + $0x320] sm:$0xff] %v519_v14  ;;  %776 = vst [vmem:[%s1327_s21 + $0x328] sm:$0xff] %v520_v15  ;;  %v543_v62 = vmul.f32 %v1311_v1, %v285_v59  ;;  %v544_v63 = vmul.f32 %v1311_v1, %v286_v60  ;;  %v287_v0 = vld [vmem:[%s1304_s28 + $0x3f0] sm:$0xff]  ;;  %v288_v2 = vld [vmem:[%s1304_s28 + $0x3f8] sm:$0xff] }
  0x75   : > { %777 = vst [vmem:[%s1327_s21 + $0x330] sm:$0xff] %v521_v19  ;;  %778 = vst [vmem:[%s1327_s21 + $0x338] sm:$0xff] %v522_v20  ;;  %v289_v3 = vld [vmem:[%s1304_s28 + $0x400] sm:$0xff]  ;;  %v545_v4 = vmul.f32 %v1311_v1, %v287_v0  ;;  %v546_v5 = vmul.f32 %v1311_v1, %v288_v2  ;;  %v290_v7 = vld [vmem:[%s1304_s28 + $0x408] sm:$0xff] }
  0x76   : > { %779 = vst [vmem:[%s1327_s21 + $0x340] sm:$0xff] %v523_v21  ;;  %780 = vst [vmem:[%s1327_s21 + $0x348] sm:$0xff] %v524_v25  ;;  %v547_v6 = vmul.f32 %v1311_v1, %v289_v3  ;;  %v291_v8 = vld [vmem:[%s1304_s28 + $0x410] sm:$0xff]  ;;  %v292_v9 = vld [vmem:[%s1304_s28 + $0x418] sm:$0xff]  ;;  %v548_v10 = vmul.f32 %v1311_v1, %v290_v7 }
  0x77   : > { %781 = vst [vmem:[%s1327_s21 + $0x350] sm:$0xff] %v525_v26  ;;  %782 = vst [vmem:[%s1327_s21 + $0x358] sm:$0xff] %v526_v27  ;;  %v549_v11 = vmul.f32 %v1311_v1, %v291_v8  ;;  %v550_v12 = vmul.f32 %v1311_v1, %v292_v9  ;;  %v293_v13 = vld [vmem:[%s1304_s28 + $0x420] sm:$0xff]  ;;  %v294_v14 = vld [vmem:[%s1304_s28 + $0x428] sm:$0xff] }
  0x78   : > { %783 = vst [vmem:[%s1327_s21 + $0x360] sm:$0xff] %v527_v31  ;;  %784 = vst [vmem:[%s1327_s21 + $0x368] sm:$0xff] %v528_v32  ;;  %v295_v15 = vld [vmem:[%s1304_s28 + $0x430] sm:$0xff]  ;;  %v551_v16 = vmul.f32 %v1311_v1, %v293_v13  ;;  %v552_v17 = vmul.f32 %v1311_v1, %v294_v14  ;;  %v296_v19 = vld [vmem:[%s1304_s28 + $0x438] sm:$0xff] }
  0x79   : > { %785 = vst [vmem:[%s1327_s21 + $0x370] sm:$0xff] %v529_v33  ;;  %786 = vst [vmem:[%s1327_s21 + $0x378] sm:$0xff] %v530_v37  ;;  %v553_v18 = vmul.f32 %v1311_v1, %v295_v15  ;;  %v297_v20 = vld [vmem:[%s1304_s28 + $0x440] sm:$0xff]  ;;  %v298_v21 = vld [vmem:[%s1304_s28 + $0x448] sm:$0xff]  ;;  %v554_v22 = vmul.f32 %v1311_v1, %v296_v19 }
  0x7a   : > { %787 = vst [vmem:[%s1327_s21 + $0x380] sm:$0xff] %v531_v38  ;;  %788 = vst [vmem:[%s1327_s21 + $0x388] sm:$0xff] %v532_v39  ;;  %v555_v23 = vmul.f32 %v1311_v1, %v297_v20  ;;  %v556_v24 = vmul.f32 %v1311_v1, %v298_v21  ;;  %v299_v25 = vld [vmem:[%s1304_s28 + $0x450] sm:$0xff]  ;;  %v300_v26 = vld [vmem:[%s1304_s28 + $0x458] sm:$0xff] }
  0x7b   : > { %789 = vst [vmem:[%s1327_s21 + $0x390] sm:$0xff] %v533_v43  ;;  %790 = vst [vmem:[%s1327_s21 + $0x398] sm:$0xff] %v534_v44  ;;  %v301_v27 = vld [vmem:[%s1304_s28 + $0x460] sm:$0xff]  ;;  %v557_v28 = vmul.f32 %v1311_v1, %v299_v25  ;;  %v558_v29 = vmul.f32 %v1311_v1, %v300_v26  ;;  %v302_v31 = vld [vmem:[%s1304_s28 + $0x468] sm:$0xff] }
  0x7c   : > { %791 = vst [vmem:[%s1327_s21 + $0x3a0] sm:$0xff] %v535_v45  ;;  %792 = vst [vmem:[%s1327_s21 + $0x3a8] sm:$0xff] %v536_v49  ;;  %v559_v30 = vmul.f32 %v1311_v1, %v301_v27  ;;  %v303_v32 = vld [vmem:[%s1304_s28 + $0x470] sm:$0xff]  ;;  %v304_v33 = vld [vmem:[%s1304_s28 + $0x478] sm:$0xff]  ;;  %v560_v34 = vmul.f32 %v1311_v1, %v302_v31 }
  0x7d   : > { %793 = vst [vmem:[%s1327_s21 + $0x3b0] sm:$0xff] %v537_v50  ;;  %794 = vst [vmem:[%s1327_s21 + $0x3b8] sm:$0xff] %v538_v51  ;;  %v561_v35 = vmul.f32 %v1311_v1, %v303_v32  ;;  %v562_v36 = vmul.f32 %v1311_v1, %v304_v33  ;;  %v305_v37 = vld [vmem:[%s1304_s28 + $0x480] sm:$0xff]  ;;  %v306_v38 = vld [vmem:[%s1304_s28 + $0x488] sm:$0xff] }
  0x7e   : > { %795 = vst [vmem:[%s1327_s21 + $0x3c0] sm:$0xff] %v539_v55  ;;  %796 = vst [vmem:[%s1327_s21 + $0x3c8] sm:$0xff] %v540_v56  ;;  %v307_v39 = vld [vmem:[%s1304_s28 + $0x490] sm:$0xff]  ;;  %v563_v40 = vmul.f32 %v1311_v1, %v305_v37  ;;  %v564_v41 = vmul.f32 %v1311_v1, %v306_v38  ;;  %v308_v43 = vld [vmem:[%s1304_s28 + $0x498] sm:$0xff] }
  0x7f   : > { %797 = vst [vmem:[%s1327_s21 + $0x3d0] sm:$0xff] %v541_v57  ;;  %798 = vst [vmem:[%s1327_s21 + $0x3d8] sm:$0xff] %v542_v61  ;;  %v565_v42 = vmul.f32 %v1311_v1, %v307_v39  ;;  %v309_v44 = vld [vmem:[%s1304_s28 + $0x4a0] sm:$0xff]  ;;  %v310_v45 = vld [vmem:[%s1304_s28 + $0x4a8] sm:$0xff]  ;;  %v566_v46 = vmul.f32 %v1311_v1, %v308_v43 }
  0x80   : > { %799 = vst [vmem:[%s1327_s21 + $0x3e0] sm:$0xff] %v543_v62  ;;  %800 = vst [vmem:[%s1327_s21 + $0x3e8] sm:$0xff] %v544_v63  ;;  %v567_v47 = vmul.f32 %v1311_v1, %v309_v44  ;;  %v568_v48 = vmul.f32 %v1311_v1, %v310_v45  ;;  %v311_v49 = vld [vmem:[%s1304_s28 + $0x4b0] sm:$0xff]  ;;  %v312_v50 = vld [vmem:[%s1304_s28 + $0x4b8] sm:$0xff] }
  0x81   : > { %801 = vst [vmem:[%s1327_s21 + $0x3f0] sm:$0xff] %v545_v4  ;;  %802 = vst [vmem:[%s1327_s21 + $0x3f8] sm:$0xff] %v546_v5  ;;  %v313_v51 = vld [vmem:[%s1304_s28 + $0x4c0] sm:$0xff]  ;;  %v569_v52 = vmul.f32 %v1311_v1, %v311_v49  ;;  %v570_v53 = vmul.f32 %v1311_v1, %v312_v50  ;;  %v314_v55 = vld [vmem:[%s1304_s28 + $0x4c8] sm:$0xff] }
  0x82   : > { %803 = vst [vmem:[%s1327_s21 + $0x400] sm:$0xff] %v547_v6  ;;  %804 = vst [vmem:[%s1327_s21 + $0x408] sm:$0xff] %v548_v10  ;;  %v571_v54 = vmul.f32 %v1311_v1, %v313_v51  ;;  %v315_v56 = vld [vmem:[%s1304_s28 + $0x4d0] sm:$0xff]  ;;  %v316_v57 = vld [vmem:[%s1304_s28 + $0x4d8] sm:$0xff]  ;;  %v572_v58 = vmul.f32 %v1311_v1, %v314_v55 }
  0x83   : > { %805 = vst [vmem:[%s1327_s21 + $0x410] sm:$0xff] %v549_v11  ;;  %806 = vst [vmem:[%s1327_s21 + $0x418] sm:$0xff] %v550_v12  ;;  %v573_v59 = vmul.f32 %v1311_v1, %v315_v56  ;;  %v574_v60 = vmul.f32 %v1311_v1, %v316_v57  ;;  %v317_v61 = vld [vmem:[%s1304_s28 + $0x4e0] sm:$0xff]  ;;  %v318_v62 = vld [vmem:[%s1304_s28 + $0x4e8] sm:$0xff] }
  0x84   : > { %807 = vst [vmem:[%s1327_s21 + $0x420] sm:$0xff] %v551_v16  ;;  %808 = vst [vmem:[%s1327_s21 + $0x428] sm:$0xff] %v552_v17  ;;  %v319_v63 = vld [vmem:[%s1304_s28 + $0x4f0] sm:$0xff]  ;;  %v575_v0 = vmul.f32 %v1311_v1, %v317_v61  ;;  %v576_v2 = vmul.f32 %v1311_v1, %v318_v62  ;;  %v320_v4 = vld [vmem:[%s1304_s28 + $0x4f8] sm:$0xff] }
  0x85   : > { %809 = vst [vmem:[%s1327_s21 + $0x430] sm:$0xff] %v553_v18  ;;  %810 = vst [vmem:[%s1327_s21 + $0x438] sm:$0xff] %v554_v22  ;;  %v577_v3 = vmul.f32 %v1311_v1, %v319_v63  ;;  %v321_v5 = vld [vmem:[%s1304_s28 + $0x500] sm:$0xff]  ;;  %v322_v6 = vld [vmem:[%s1304_s28 + $0x508] sm:$0xff]  ;;  %v578_v7 = vmul.f32 %v1311_v1, %v320_v4 }
  0x86   : > { %811 = vst [vmem:[%s1327_s21 + $0x440] sm:$0xff] %v555_v23  ;;  %812 = vst [vmem:[%s1327_s21 + $0x448] sm:$0xff] %v556_v24  ;;  %v579_v8 = vmul.f32 %v1311_v1, %v321_v5  ;;  %v580_v9 = vmul.f32 %v1311_v1, %v322_v6  ;;  %v323_v10 = vld [vmem:[%s1304_s28 + $0x510] sm:$0xff]  ;;  %v324_v11 = vld [vmem:[%s1304_s28 + $0x518] sm:$0xff] }
  0x87   : > { %813 = vst [vmem:[%s1327_s21 + $0x450] sm:$0xff] %v557_v28  ;;  %814 = vst [vmem:[%s1327_s21 + $0x458] sm:$0xff] %v558_v29  ;;  %v325_v12 = vld [vmem:[%s1304_s28 + $0x520] sm:$0xff]  ;;  %v581_v13 = vmul.f32 %v1311_v1, %v323_v10  ;;  %v582_v14 = vmul.f32 %v1311_v1, %v324_v11  ;;  %v326_v16 = vld [vmem:[%s1304_s28 + $0x528] sm:$0xff] }
  0x88   : > { %815 = vst [vmem:[%s1327_s21 + $0x460] sm:$0xff] %v559_v30  ;;  %816 = vst [vmem:[%s1327_s21 + $0x468] sm:$0xff] %v560_v34  ;;  %v583_v15 = vmul.f32 %v1311_v1, %v325_v12  ;;  %v327_v17 = vld [vmem:[%s1304_s28 + $0x530] sm:$0xff]  ;;  %v328_v18 = vld [vmem:[%s1304_s28 + $0x538] sm:$0xff]  ;;  %v584_v19 = vmul.f32 %v1311_v1, %v326_v16 }
  0x89   : > { %817 = vst [vmem:[%s1327_s21 + $0x470] sm:$0xff] %v561_v35  ;;  %818 = vst [vmem:[%s1327_s21 + $0x478] sm:$0xff] %v562_v36  ;;  %v585_v20 = vmul.f32 %v1311_v1, %v327_v17  ;;  %v586_v21 = vmul.f32 %v1311_v1, %v328_v18  ;;  %v329_v22 = vld [vmem:[%s1304_s28 + $0x540] sm:$0xff]  ;;  %v330_v23 = vld [vmem:[%s1304_s28 + $0x548] sm:$0xff] }
  0x8a   : > { %819 = vst [vmem:[%s1327_s21 + $0x480] sm:$0xff] %v563_v40  ;;  %820 = vst [vmem:[%s1327_s21 + $0x488] sm:$0xff] %v564_v41  ;;  %v331_v24 = vld [vmem:[%s1304_s28 + $0x550] sm:$0xff]  ;;  %v587_v25 = vmul.f32 %v1311_v1, %v329_v22  ;;  %v588_v26 = vmul.f32 %v1311_v1, %v330_v23  ;;  %v332_v28 = vld [vmem:[%s1304_s28 + $0x558] sm:$0xff] }
  0x8b   : > { %821 = vst [vmem:[%s1327_s21 + $0x490] sm:$0xff] %v565_v42  ;;  %822 = vst [vmem:[%s1327_s21 + $0x498] sm:$0xff] %v566_v46  ;;  %v589_v27 = vmul.f32 %v1311_v1, %v331_v24  ;;  %v333_v29 = vld [vmem:[%s1304_s28 + $0x560] sm:$0xff]  ;;  %v334_v30 = vld [vmem:[%s1304_s28 + $0x568] sm:$0xff]  ;;  %v590_v31 = vmul.f32 %v1311_v1, %v332_v28 }
  0x8c   : > { %823 = vst [vmem:[%s1327_s21 + $0x4a0] sm:$0xff] %v567_v47  ;;  %824 = vst [vmem:[%s1327_s21 + $0x4a8] sm:$0xff] %v568_v48  ;;  %v591_v32 = vmul.f32 %v1311_v1, %v333_v29  ;;  %v592_v33 = vmul.f32 %v1311_v1, %v334_v30  ;;  %v335_v34 = vld [vmem:[%s1304_s28 + $0x570] sm:$0xff]  ;;  %v336_v35 = vld [vmem:[%s1304_s28 + $0x578] sm:$0xff] }
  0x8d   : > { %825 = vst [vmem:[%s1327_s21 + $0x4b0] sm:$0xff] %v569_v52  ;;  %826 = vst [vmem:[%s1327_s21 + $0x4b8] sm:$0xff] %v570_v53  ;;  %v337_v36 = vld [vmem:[%s1304_s28 + $0x580] sm:$0xff]  ;;  %v593_v37 = vmul.f32 %v1311_v1, %v335_v34  ;;  %v594_v38 = vmul.f32 %v1311_v1, %v336_v35  ;;  %v338_v40 = vld [vmem:[%s1304_s28 + $0x588] sm:$0xff] }
  0x8e   : > { %827 = vst [vmem:[%s1327_s21 + $0x4c0] sm:$0xff] %v571_v54  ;;  %828 = vst [vmem:[%s1327_s21 + $0x4c8] sm:$0xff] %v572_v58  ;;  %v595_v39 = vmul.f32 %v1311_v1, %v337_v36  ;;  %v339_v41 = vld [vmem:[%s1304_s28 + $0x590] sm:$0xff]  ;;  %v340_v42 = vld [vmem:[%s1304_s28 + $0x598] sm:$0xff]  ;;  %v596_v43 = vmul.f32 %v1311_v1, %v338_v40 }
  0x8f   : > { %829 = vst [vmem:[%s1327_s21 + $0x4d0] sm:$0xff] %v573_v59  ;;  %830 = vst [vmem:[%s1327_s21 + $0x4d8] sm:$0xff] %v574_v60  ;;  %v597_v44 = vmul.f32 %v1311_v1, %v339_v41  ;;  %v598_v45 = vmul.f32 %v1311_v1, %v340_v42  ;;  %v341_v46 = vld [vmem:[%s1304_s28 + $0x5a0] sm:$0xff]  ;;  %v342_v47 = vld [vmem:[%s1304_s28 + $0x5a8] sm:$0xff] }
  0x90   : > { %831 = vst [vmem:[%s1327_s21 + $0x4e0] sm:$0xff] %v575_v0  ;;  %832 = vst [vmem:[%s1327_s21 + $0x4e8] sm:$0xff] %v576_v2  ;;  %v343_v48 = vld [vmem:[%s1304_s28 + $0x5b0] sm:$0xff]  ;;  %v599_v49 = vmul.f32 %v1311_v1, %v341_v46  ;;  %v600_v50 = vmul.f32 %v1311_v1, %v342_v47  ;;  %v344_v52 = vld [vmem:[%s1304_s28 + $0x5b8] sm:$0xff] }
  0x91   : > { %833 = vst [vmem:[%s1327_s21 + $0x4f0] sm:$0xff] %v577_v3  ;;  %834 = vst [vmem:[%s1327_s21 + $0x4f8] sm:$0xff] %v578_v7  ;;  %v601_v51 = vmul.f32 %v1311_v1, %v343_v48  ;;  %v345_v53 = vld [vmem:[%s1304_s28 + $0x5c0] sm:$0xff]  ;;  %v346_v54 = vld [vmem:[%s1304_s28 + $0x5c8] sm:$0xff]  ;;  %v602_v55 = vmul.f32 %v1311_v1, %v344_v52 }
  0x92   : > { %835 = vst [vmem:[%s1327_s21 + $0x500] sm:$0xff] %v579_v8  ;;  %836 = vst [vmem:[%s1327_s21 + $0x508] sm:$0xff] %v580_v9  ;;  %v603_v56 = vmul.f32 %v1311_v1, %v345_v53  ;;  %v604_v57 = vmul.f32 %v1311_v1, %v346_v54  ;;  %v347_v58 = vld [vmem:[%s1304_s28 + $0x5d0] sm:$0xff]  ;;  %v348_v59 = vld [vmem:[%s1304_s28 + $0x5d8] sm:$0xff] }
  0x93   : > { %837 = vst [vmem:[%s1327_s21 + $0x510] sm:$0xff] %v581_v13  ;;  %838 = vst [vmem:[%s1327_s21 + $0x518] sm:$0xff] %v582_v14  ;;  %v349_v60 = vld [vmem:[%s1304_s28 + $0x5e0] sm:$0xff]  ;;  %v605_v61 = vmul.f32 %v1311_v1, %v347_v58  ;;  %v606_v62 = vmul.f32 %v1311_v1, %v348_v59  ;;  %v350_v0 = vld [vmem:[%s1304_s28 + $0x5e8] sm:$0xff] }
  0x94   : > { %839 = vst [vmem:[%s1327_s21 + $0x520] sm:$0xff] %v583_v15  ;;  %840 = vst [vmem:[%s1327_s21 + $0x528] sm:$0xff] %v584_v19  ;;  %v607_v63 = vmul.f32 %v1311_v1, %v349_v60  ;;  %v351_v2 = vld [vmem:[%s1304_s28 + $0x5f0] sm:$0xff]  ;;  %v352_v3 = vld [vmem:[%s1304_s28 + $0x5f8] sm:$0xff]  ;;  %v608_v4 = vmul.f32 %v1311_v1, %v350_v0 }
  0x95   : > { %841 = vst [vmem:[%s1327_s21 + $0x530] sm:$0xff] %v585_v20  ;;  %842 = vst [vmem:[%s1327_s21 + $0x538] sm:$0xff] %v586_v21  ;;  %v609_v5 = vmul.f32 %v1311_v1, %v351_v2  ;;  %v610_v6 = vmul.f32 %v1311_v1, %v352_v3  ;;  %v353_v7 = vld [vmem:[%s1304_s28 + $0x600] sm:$0xff]  ;;  %v354_v8 = vld [vmem:[%s1304_s28 + $0x608] sm:$0xff] }
  0x96   : > { %843 = vst [vmem:[%s1327_s21 + $0x540] sm:$0xff] %v587_v25  ;;  %844 = vst [vmem:[%s1327_s21 + $0x548] sm:$0xff] %v588_v26  ;;  %v355_v9 = vld [vmem:[%s1304_s28 + $0x610] sm:$0xff]  ;;  %v611_v10 = vmul.f32 %v1311_v1, %v353_v7  ;;  %v612_v11 = vmul.f32 %v1311_v1, %v354_v8  ;;  %v356_v13 = vld [vmem:[%s1304_s28 + $0x618] sm:$0xff] }
  0x97   : > { %845 = vst [vmem:[%s1327_s21 + $0x550] sm:$0xff] %v589_v27  ;;  %846 = vst [vmem:[%s1327_s21 + $0x558] sm:$0xff] %v590_v31  ;;  %v613_v12 = vmul.f32 %v1311_v1, %v355_v9  ;;  %v357_v14 = vld [vmem:[%s1304_s28 + $0x620] sm:$0xff]  ;;  %v358_v15 = vld [vmem:[%s1304_s28 + $0x628] sm:$0xff]  ;;  %v614_v16 = vmul.f32 %v1311_v1, %v356_v13 }
  0x98   : > { %847 = vst [vmem:[%s1327_s21 + $0x560] sm:$0xff] %v591_v32  ;;  %848 = vst [vmem:[%s1327_s21 + $0x568] sm:$0xff] %v592_v33  ;;  %v615_v17 = vmul.f32 %v1311_v1, %v357_v14  ;;  %v616_v18 = vmul.f32 %v1311_v1, %v358_v15  ;;  %v359_v19 = vld [vmem:[%s1304_s28 + $0x630] sm:$0xff]  ;;  %v360_v20 = vld [vmem:[%s1304_s28 + $0x638] sm:$0xff] }
  0x99   : > { %849 = vst [vmem:[%s1327_s21 + $0x570] sm:$0xff] %v593_v37  ;;  %850 = vst [vmem:[%s1327_s21 + $0x578] sm:$0xff] %v594_v38  ;;  %v361_v21 = vld [vmem:[%s1304_s28 + $0x640] sm:$0xff]  ;;  %v617_v22 = vmul.f32 %v1311_v1, %v359_v19  ;;  %v618_v23 = vmul.f32 %v1311_v1, %v360_v20  ;;  %v362_v25 = vld [vmem:[%s1304_s28 + $0x648] sm:$0xff] }
  0x9a   : > { %851 = vst [vmem:[%s1327_s21 + $0x580] sm:$0xff] %v595_v39  ;;  %852 = vst [vmem:[%s1327_s21 + $0x588] sm:$0xff] %v596_v43  ;;  %v619_v24 = vmul.f32 %v1311_v1, %v361_v21  ;;  %v363_v26 = vld [vmem:[%s1304_s28 + $0x650] sm:$0xff]  ;;  %v364_v27 = vld [vmem:[%s1304_s28 + $0x658] sm:$0xff]  ;;  %v620_v28 = vmul.f32 %v1311_v1, %v362_v25 }
  0x9b   : > { %853 = vst [vmem:[%s1327_s21 + $0x590] sm:$0xff] %v597_v44  ;;  %854 = vst [vmem:[%s1327_s21 + $0x598] sm:$0xff] %v598_v45  ;;  %v621_v29 = vmul.f32 %v1311_v1, %v363_v26  ;;  %v622_v30 = vmul.f32 %v1311_v1, %v364_v27  ;;  %v365_v31 = vld [vmem:[%s1304_s28 + $0x660] sm:$0xff]  ;;  %v366_v32 = vld [vmem:[%s1304_s28 + $0x668] sm:$0xff] }
  0x9c   : > { %855 = vst [vmem:[%s1327_s21 + $0x5a0] sm:$0xff] %v599_v49  ;;  %856 = vst [vmem:[%s1327_s21 + $0x5a8] sm:$0xff] %v600_v50  ;;  %v367_v33 = vld [vmem:[%s1304_s28 + $0x670] sm:$0xff]  ;;  %v623_v34 = vmul.f32 %v1311_v1, %v365_v31  ;;  %v624_v35 = vmul.f32 %v1311_v1, %v366_v32  ;;  %v368_v37 = vld [vmem:[%s1304_s28 + $0x678] sm:$0xff] }
  0x9d   : > { %857 = vst [vmem:[%s1327_s21 + $0x5b0] sm:$0xff] %v601_v51  ;;  %858 = vst [vmem:[%s1327_s21 + $0x5b8] sm:$0xff] %v602_v55  ;;  %v625_v36 = vmul.f32 %v1311_v1, %v367_v33  ;;  %v369_v38 = vld [vmem:[%s1304_s28 + $0x680] sm:$0xff]  ;;  %v370_v39 = vld [vmem:[%s1304_s28 + $0x688] sm:$0xff]  ;;  %v626_v40 = vmul.f32 %v1311_v1, %v368_v37 }
  0x9e   : > { %859 = vst [vmem:[%s1327_s21 + $0x5c0] sm:$0xff] %v603_v56  ;;  %860 = vst [vmem:[%s1327_s21 + $0x5c8] sm:$0xff] %v604_v57  ;;  %v627_v41 = vmul.f32 %v1311_v1, %v369_v38  ;;  %v628_v42 = vmul.f32 %v1311_v1, %v370_v39  ;;  %v371_v43 = vld [vmem:[%s1304_s28 + $0x690] sm:$0xff]  ;;  %v372_v44 = vld [vmem:[%s1304_s28 + $0x698] sm:$0xff] }
  0x9f   : > { %861 = vst [vmem:[%s1327_s21 + $0x5d0] sm:$0xff] %v605_v61  ;;  %862 = vst [vmem:[%s1327_s21 + $0x5d8] sm:$0xff] %v606_v62  ;;  %v373_v45 = vld [vmem:[%s1304_s28 + $0x6a0] sm:$0xff]  ;;  %v629_v46 = vmul.f32 %v1311_v1, %v371_v43  ;;  %v630_v47 = vmul.f32 %v1311_v1, %v372_v44  ;;  %v374_v49 = vld [vmem:[%s1304_s28 + $0x6a8] sm:$0xff] }
  0xa0   : > { %863 = vst [vmem:[%s1327_s21 + $0x5e0] sm:$0xff] %v607_v63  ;;  %864 = vst [vmem:[%s1327_s21 + $0x5e8] sm:$0xff] %v608_v4  ;;  %v631_v48 = vmul.f32 %v1311_v1, %v373_v45  ;;  %v375_v50 = vld [vmem:[%s1304_s28 + $0x6b0] sm:$0xff]  ;;  %v376_v51 = vld [vmem:[%s1304_s28 + $0x6b8] sm:$0xff]  ;;  %v632_v52 = vmul.f32 %v1311_v1, %v374_v49 }
  0xa1   : > { %865 = vst [vmem:[%s1327_s21 + $0x5f0] sm:$0xff] %v609_v5  ;;  %866 = vst [vmem:[%s1327_s21 + $0x5f8] sm:$0xff] %v610_v6  ;;  %v633_v53 = vmul.f32 %v1311_v1, %v375_v50  ;;  %v634_v54 = vmul.f32 %v1311_v1, %v376_v51  ;;  %v377_v55 = vld [vmem:[%s1304_s28 + $0x6c0] sm:$0xff]  ;;  %v378_v56 = vld [vmem:[%s1304_s28 + $0x6c8] sm:$0xff] }
  0xa2   : > { %867 = vst [vmem:[%s1327_s21 + $0x600] sm:$0xff] %v611_v10  ;;  %868 = vst [vmem:[%s1327_s21 + $0x608] sm:$0xff] %v612_v11  ;;  %v379_v57 = vld [vmem:[%s1304_s28 + $0x6d0] sm:$0xff]  ;;  %v635_v58 = vmul.f32 %v1311_v1, %v377_v55  ;;  %v636_v59 = vmul.f32 %v1311_v1, %v378_v56  ;;  %v380_v61 = vld [vmem:[%s1304_s28 + $0x6d8] sm:$0xff] }
  0xa3   : > { %869 = vst [vmem:[%s1327_s21 + $0x610] sm:$0xff] %v613_v12  ;;  %870 = vst [vmem:[%s1327_s21 + $0x618] sm:$0xff] %v614_v16  ;;  %v637_v60 = vmul.f32 %v1311_v1, %v379_v57  ;;  %v381_v62 = vld [vmem:[%s1304_s28 + $0x6e0] sm:$0xff]  ;;  %v382_v63 = vld [vmem:[%s1304_s28 + $0x6e8] sm:$0xff]  ;;  %v638_v0 = vmul.f32 %v1311_v1, %v380_v61 }
  0xa4   : > { %871 = vst [vmem:[%s1327_s21 + $0x620] sm:$0xff] %v615_v17  ;;  %872 = vst [vmem:[%s1327_s21 + $0x628] sm:$0xff] %v616_v18  ;;  %v639_v2 = vmul.f32 %v1311_v1, %v381_v62  ;;  %v640_v3 = vmul.f32 %v1311_v1, %v382_v63  ;;  %v383_v4 = vld [vmem:[%s1304_s28 + $0x6f0] sm:$0xff]  ;;  %v384_v5 = vld [vmem:[%s1304_s28 + $0x6f8] sm:$0xff] }
  0xa5   : > { %873 = vst [vmem:[%s1327_s21 + $0x630] sm:$0xff] %v617_v22  ;;  %874 = vst [vmem:[%s1327_s21 + $0x638] sm:$0xff] %v618_v23  ;;  %v385_v6 = vld [vmem:[%s1304_s28 + $0x700] sm:$0xff]  ;;  %v641_v7 = vmul.f32 %v1311_v1, %v383_v4  ;;  %v642_v8 = vmul.f32 %v1311_v1, %v384_v5  ;;  %v386_v10 = vld [vmem:[%s1304_s28 + $0x708] sm:$0xff] }
  0xa6   : > { %875 = vst [vmem:[%s1327_s21 + $0x640] sm:$0xff] %v619_v24  ;;  %876 = vst [vmem:[%s1327_s21 + $0x648] sm:$0xff] %v620_v28  ;;  %v643_v9 = vmul.f32 %v1311_v1, %v385_v6  ;;  %v387_v11 = vld [vmem:[%s1304_s28 + $0x710] sm:$0xff]  ;;  %v388_v12 = vld [vmem:[%s1304_s28 + $0x718] sm:$0xff]  ;;  %v644_v13 = vmul.f32 %v1311_v1, %v386_v10 }
  0xa7   : > { %877 = vst [vmem:[%s1327_s21 + $0x650] sm:$0xff] %v621_v29  ;;  %878 = vst [vmem:[%s1327_s21 + $0x658] sm:$0xff] %v622_v30  ;;  %v645_v14 = vmul.f32 %v1311_v1, %v387_v11  ;;  %v646_v15 = vmul.f32 %v1311_v1, %v388_v12  ;;  %v389_v16 = vld [vmem:[%s1304_s28 + $0x720] sm:$0xff]  ;;  %v390_v17 = vld [vmem:[%s1304_s28 + $0x728] sm:$0xff] }
  0xa8   : > { %879 = vst [vmem:[%s1327_s21 + $0x660] sm:$0xff] %v623_v34  ;;  %880 = vst [vmem:[%s1327_s21 + $0x668] sm:$0xff] %v624_v35  ;;  %v391_v18 = vld [vmem:[%s1304_s28 + $0x730] sm:$0xff]  ;;  %v647_v19 = vmul.f32 %v1311_v1, %v389_v16  ;;  %v648_v20 = vmul.f32 %v1311_v1, %v390_v17  ;;  %v392_v22 = vld [vmem:[%s1304_s28 + $0x738] sm:$0xff] }
  0xa9   : > { %881 = vst [vmem:[%s1327_s21 + $0x670] sm:$0xff] %v625_v36  ;;  %882 = vst [vmem:[%s1327_s21 + $0x678] sm:$0xff] %v626_v40  ;;  %v649_v21 = vmul.f32 %v1311_v1, %v391_v18  ;;  %v393_v23 = vld [vmem:[%s1304_s28 + $0x740] sm:$0xff]  ;;  %v394_v24 = vld [vmem:[%s1304_s28 + $0x748] sm:$0xff]  ;;  %v650_v25 = vmul.f32 %v1311_v1, %v392_v22 }
  0xaa   : > { %883 = vst [vmem:[%s1327_s21 + $0x680] sm:$0xff] %v627_v41  ;;  %884 = vst [vmem:[%s1327_s21 + $0x688] sm:$0xff] %v628_v42  ;;  %v651_v26 = vmul.f32 %v1311_v1, %v393_v23  ;;  %v652_v27 = vmul.f32 %v1311_v1, %v394_v24  ;;  %v395_v28 = vld [vmem:[%s1304_s28 + $0x750] sm:$0xff]  ;;  %v396_v29 = vld [vmem:[%s1304_s28 + $0x758] sm:$0xff] }
  0xab   : > { %885 = vst [vmem:[%s1327_s21 + $0x690] sm:$0xff] %v629_v46  ;;  %886 = vst [vmem:[%s1327_s21 + $0x698] sm:$0xff] %v630_v47  ;;  %v397_v30 = vld [vmem:[%s1304_s28 + $0x760] sm:$0xff]  ;;  %v653_v31 = vmul.f32 %v1311_v1, %v395_v28  ;;  %v654_v32 = vmul.f32 %v1311_v1, %v396_v29  ;;  %v398_v34 = vld [vmem:[%s1304_s28 + $0x768] sm:$0xff] }
  0xac   : > { %887 = vst [vmem:[%s1327_s21 + $0x6a0] sm:$0xff] %v631_v48  ;;  %888 = vst [vmem:[%s1327_s21 + $0x6a8] sm:$0xff] %v632_v52  ;;  %v655_v33 = vmul.f32 %v1311_v1, %v397_v30  ;;  %v399_v35 = vld [vmem:[%s1304_s28 + $0x770] sm:$0xff]  ;;  %v400_v36 = vld [vmem:[%s1304_s28 + $0x778] sm:$0xff]  ;;  %v656_v37 = vmul.f32 %v1311_v1, %v398_v34 }
  0xad   : > { %889 = vst [vmem:[%s1327_s21 + $0x6b0] sm:$0xff] %v633_v53  ;;  %890 = vst [vmem:[%s1327_s21 + $0x6b8] sm:$0xff] %v634_v54  ;;  %v657_v38 = vmul.f32 %v1311_v1, %v399_v35  ;;  %v658_v39 = vmul.f32 %v1311_v1, %v400_v36  ;;  %v401_v40 = vld [vmem:[%s1304_s28 + $0x780] sm:$0xff]  ;;  %v402_v41 = vld [vmem:[%s1304_s28 + $0x788] sm:$0xff] }
  0xae   : > { %891 = vst [vmem:[%s1327_s21 + $0x6c0] sm:$0xff] %v635_v58  ;;  %892 = vst [vmem:[%s1327_s21 + $0x6c8] sm:$0xff] %v636_v59  ;;  %v403_v42 = vld [vmem:[%s1304_s28 + $0x790] sm:$0xff]  ;;  %v659_v43 = vmul.f32 %v1311_v1, %v401_v40  ;;  %v660_v44 = vmul.f32 %v1311_v1, %v402_v41  ;;  %v404_v46 = vld [vmem:[%s1304_s28 + $0x798] sm:$0xff] }
  0xaf   : > { %893 = vst [vmem:[%s1327_s21 + $0x6d0] sm:$0xff] %v637_v60  ;;  %894 = vst [vmem:[%s1327_s21 + $0x6d8] sm:$0xff] %v638_v0  ;;  %v661_v45 = vmul.f32 %v1311_v1, %v403_v42  ;;  %v405_v47 = vld [vmem:[%s1304_s28 + $0x7a0] sm:$0xff]  ;;  %v406_v48 = vld [vmem:[%s1304_s28 + $0x7a8] sm:$0xff]  ;;  %v662_v49 = vmul.f32 %v1311_v1, %v404_v46 }
  0xb0   : > { %895 = vst [vmem:[%s1327_s21 + $0x6e0] sm:$0xff] %v639_v2  ;;  %896 = vst [vmem:[%s1327_s21 + $0x6e8] sm:$0xff] %v640_v3  ;;  %v663_v50 = vmul.f32 %v1311_v1, %v405_v47  ;;  %v664_v51 = vmul.f32 %v1311_v1, %v406_v48  ;;  %v407_v52 = vld [vmem:[%s1304_s28 + $0x7b0] sm:$0xff]  ;;  %v408_v53 = vld [vmem:[%s1304_s28 + $0x7b8] sm:$0xff] }
  0xb1   : > { %897 = vst [vmem:[%s1327_s21 + $0x6f0] sm:$0xff] %v641_v7  ;;  %898 = vst [vmem:[%s1327_s21 + $0x6f8] sm:$0xff] %v642_v8  ;;  %v409_v54 = vld [vmem:[%s1304_s28 + $0x7c0] sm:$0xff]  ;;  %v665_v55 = vmul.f32 %v1311_v1, %v407_v52  ;;  %v666_v56 = vmul.f32 %v1311_v1, %v408_v53  ;;  %v410_v58 = vld [vmem:[%s1304_s28 + $0x7c8] sm:$0xff] }
  0xb2   : > { %899 = vst [vmem:[%s1327_s21 + $0x700] sm:$0xff] %v643_v9  ;;  %900 = vst [vmem:[%s1327_s21 + $0x708] sm:$0xff] %v644_v13  ;;  %v667_v57 = vmul.f32 %v1311_v1, %v409_v54  ;;  %v411_v59 = vld [vmem:[%s1304_s28 + $0x7d0] sm:$0xff]  ;;  %v412_v60 = vld [vmem:[%s1304_s28 + $0x7d8] sm:$0xff]  ;;  %v668_v61 = vmul.f32 %v1311_v1, %v410_v58 }
  0xb3   : > { %901 = vst [vmem:[%s1327_s21 + $0x710] sm:$0xff] %v645_v14  ;;  %902 = vst [vmem:[%s1327_s21 + $0x718] sm:$0xff] %v646_v15  ;;  %v669_v62 = vmul.f32 %v1311_v1, %v411_v59  ;;  %v670_v63 = vmul.f32 %v1311_v1, %v412_v60  ;;  %v413_v0 = vld [vmem:[%s1304_s28 + $0x7e0] sm:$0xff]  ;;  %v414_v2 = vld [vmem:[%s1304_s28 + $0x7e8] sm:$0xff] }
  0xb4   : > { %903 = vst [vmem:[%s1327_s21 + $0x720] sm:$0xff] %v647_v19  ;;  %904 = vst [vmem:[%s1327_s21 + $0x728] sm:$0xff] %v648_v20  ;;  %v415_v3 = vld [vmem:[%s1304_s28 + $0x7f0] sm:$0xff]  ;;  %v671_v4 = vmul.f32 %v1311_v1, %v413_v0  ;;  %v672_v5 = vmul.f32 %v1311_v1, %v414_v2  ;;  %v416_v7 = vld [vmem:[%s1304_s28 + $0x7f8] sm:$0xff] }
  0xb5   : > { %905 = vst [vmem:[%s1327_s21 + $0x730] sm:$0xff] %v649_v21  ;;  %906 = vst [vmem:[%s1327_s21 + $0x738] sm:$0xff] %v650_v25  ;;  %v673_v6 = vmul.f32 %v1311_v1, %v415_v3  ;;  %v674_v8 = vmul.f32 %v1311_v1, %v416_v7 }
  0xb6   : > { %907 = vst [vmem:[%s1327_s21 + $0x740] sm:$0xff] %v651_v26  ;;  %908 = vst [vmem:[%s1327_s21 + $0x748] sm:$0xff] %v652_v27 }
  0xb7   : > { %909 = vst [vmem:[%s1327_s21 + $0x750] sm:$0xff] %v653_v31  ;;  %910 = vst [vmem:[%s1327_s21 + $0x758] sm:$0xff] %v654_v32 }
  0xb8   : > { %911 = vst [vmem:[%s1327_s21 + $0x760] sm:$0xff] %v655_v33  ;;  %912 = vst [vmem:[%s1327_s21 + $0x768] sm:$0xff] %v656_v37 }
  0xb9   : > { %913 = vst [vmem:[%s1327_s21 + $0x770] sm:$0xff] %v657_v38  ;;  %914 = vst [vmem:[%s1327_s21 + $0x778] sm:$0xff] %v658_v39 }
  0xba   : > { %915 = vst [vmem:[%s1327_s21 + $0x780] sm:$0xff] %v659_v43  ;;  %916 = vst [vmem:[%s1327_s21 + $0x788] sm:$0xff] %v660_v44 }
  0xbb   : > { %917 = vst [vmem:[%s1327_s21 + $0x790] sm:$0xff] %v661_v45  ;;  %918 = vst [vmem:[%s1327_s21 + $0x798] sm:$0xff] %v662_v49 }
  0xbc   : > { %919 = vst [vmem:[%s1327_s21 + $0x7a0] sm:$0xff] %v663_v50  ;;  %920 = vst [vmem:[%s1327_s21 + $0x7a8] sm:$0xff] %v664_v51 }
  0xbd   : > { %921 = vst [vmem:[%s1327_s21 + $0x7b0] sm:$0xff] %v665_v55  ;;  %922 = vst [vmem:[%s1327_s21 + $0x7b8] sm:$0xff] %v666_v56 }
  0xbe   : > { %923 = vst [vmem:[%s1327_s21 + $0x7c0] sm:$0xff] %v667_v57  ;;  %924 = vst [vmem:[%s1327_s21 + $0x7c8] sm:$0xff] %v668_v61 }
  0xbf   : > { %925 = vst [vmem:[%s1327_s21 + $0x7d0] sm:$0xff] %v669_v62  ;;  %926 = vst [vmem:[%s1327_s21 + $0x7d8] sm:$0xff] %v670_v63 }
  0xc0   : > { %927 = vst [vmem:[%s1327_s21 + $0x7e0] sm:$0xff] %v671_v4  ;;  %928 = vst [vmem:[%s1327_s21 + $0x7e8] sm:$0xff] %v672_v5 }
  0xc1   : > { %929 = vst [vmem:[%s1327_s21 + $0x7f0] sm:$0xff] %v673_v6  ;;  %930 = vst [vmem:[%s1327_s21 + $0x7f8] sm:$0xff] %v674_v8 }
  0xc2   : > { %1121 = shalt.err (!%p1118_p3)
}
  0xc3   : > { %s1122_s15 = scalar_lea.hbm %s2083_s5, 32768  ;;  %s1126_s20 = scalar_lea.hbm %s2132_s2, 131072 }
  0xc4   : > { %p1123_p5 = scmp.ne.s32.totalorder %s2083_s5, %s1122_s15  ;;  %p1127_p13 = scmp.lt.u32.totalorder %s2083_s5, %s2132_s2 }
  0xc5   : > { %p1128_p0 = scmp.lt.u32.totalorder %s1126_s20, %s1122_s15  ;;  %p1130_p6 = scmp.lt.u32.totalorder %s1122_s15, %s2083_s5 }
  0xc6   : > { %p1124_p7 = pnand %p1123_p5, %p2141_p10 }
  0xc7   : > { %p1129_p2 = por %p1128_p0, %p1127_p13 }
  0xc8   : > { %p1125_p8 = pneg %p1124_p7 }
  0xc9   : > { %p1131_p11 = por %p1130_p6, %p1129_p2 }
  0xcb   : > { %p1132_p12 = pnand %p1131_p11, %p1125_p8 }
  0xcd   : > { %1135 = shalt.err (!%p1132_p12)
}
  0xce   : > { %1034 = dma.vmem_to_hbm [thread:$0]  (%p2141_p10), %s2085_s3, 32768, %s2083_s5, %s932_s6  }
  0xcf PF: > { %p1045_p4 = scmp.ge.s32.totalorder %s1174_s14, 2  ;;  %s958_s26 = sand.u32 1, %s1162_s11  }
  0xd0   : > { %p2142_p9 = scmp.ne.s32.totalorder %s2137_s23, 0  ;;  %s959_s27 = scalar_lea.sflag [#allocation5], %s958_s26 }
  0xd2   : > { %p1041_p1 = pnand %p1045_p4, %p2142_p9 }
  0xd4   : > { %1157 = dma.done.wait (!%p1041_p1), %s959_s27, 32768  }
  0xd5   : > { %1159 = vsyncadd (!%p1041_p1), %s959_s27, 4294934528  ;;  %p16_p3 = scmp.ge.s32.totalorder %s1221_s16, 6   ;;  %s2143_s11 = smov %s1166_s12 }
  0xd6   : > { %s2144_s12 = smov %s1170_s13  ;;  %s2145_s13 = smov %s1233_s19 }
  0xd7   : > { %s2146_s14 = smov %s1221_s16  ;;  %18 = sbr.rel (!%p16_p3) target bundleno = 7 (0x7), region = 73 }
  0xde   :  { %964 = vsyncpa [#allocation4], 1 }
  0xdf   :  { %966 = vsyncpa [#allocation4 + $0x1], 1 }
  0xe0   :  { %967 = vsyncpa [#allocation5], 1 }
  0xe1   :  { %969 = vsyncpa [#allocation5 + $0x1], 1 }

</bundles_post_ra>
